<compile_context>
chip_gen: v6e
topology: v6e:2x2x1
jax: 0.10.0
libtpu: 0.0.40
codegen_flags: <defaults>
</compile_context>

<pallas_src>
import jax
import jax.numpy as jnp
from jax.experimental import pallas as pl
from jax.experimental.pallas import tpu as pltpu

NEG_SLOPE = 0.01  # PyTorch nn.LeakyReLU default negative slope
EPS = 1e-6


def _round_up(x, m):
    return ((x + m - 1) // m) * m


def _cdiv(a, b):
    return (a + b - 1) // b


# --------------------------------------------------------------------------
# Kernel: fused per-edge attention MLP (the O(E*H*D) hot path)
# --------------------------------------------------------------------------
def _att_mlp_kernel(a_ref, w1_ref, b1_ref, v_ref, out_ref):
    # a_ref  : [tE, H*D]    input dtype   edges-major, heads flattened
    # w1_ref : [H*D, H*D2]  bf16          block-diagonal first linear
    # b1_ref : [1, H*D2]    f32           per-head-tiled bias
    # v_ref  : [1, H*D2]    f32           kron(wh, w2): Linear(D2->1) + head mix
    # out_ref: [1, tE]      f32           lane-dense attention row (minus const)
    a = a_ref[...].astype(jnp.bfloat16)        # cast in-kernel, no HBM convert pass
    h = jnp.dot(a, w1_ref[...], preferred_element_type=jnp.float32)
    h = h + b1_ref[...]
    # Dropout == identity at inference; LeakyReLU in f32 (v5e has no bf16 VPU).
    h = jnp.where(h > 0, h, NEG_SLOPE * h)
    # Linear(D2->1) + weighted_head_layer folded into ONE MXU mat-vec:
    #   out[0, e] = sum_k v[0, k] * h[e, k]
    # MXU does the reduce (no XLU cross-lane rotate+add chain) and the [1, tE]
    # result stores lane-dense (no masked (tE,1) column stores).
    out_ref[...] = jax.lax.dot_general(
        v_ref[...], h,
        dimension_numbers=(((1,), (1,)), ((), ())),
        precision=jax.lax.Precision.HIGHEST,
        preferred_element_type=jnp.float32)


def _fold_params(params, H, D):
    """Fold the per-head MLP into one [HD]->[HD2] matmul + one reduce vector.
    Tiny; hoist / cache across calls in production (or let jit const-fold)."""
    w1, b1, w2, b2, wh = params
    D2 = w1.shape[1]
    HD, HD2 = H * D, H * D2
    w1f = w1.astype(jnp.float32)
    w1_blk = jnp.einsum('hg,dk->hdgk', jnp.eye(H, dtype=jnp.float32),
                        w1f).reshape(HD, HD2)                          # block diag
    b1_t = jnp.tile(b1.astype(jnp.float32), H).reshape(1, HD2)
    v = (wh.astype(jnp.float32).reshape(H, 1) *
         w2.astype(jnp.float32)[:, 0].reshape(1, D2)).reshape(1, HD2)  # kron(wh, w2)
    c = b2.astype(jnp.float32)[0] * jnp.sum(wh.astype(jnp.float32))    # constant term
    return w1_blk.astype(jnp.bfloat16), b1_t, v, c


# --------------------------------------------------------------------------
# Wrapper (forward pass, eval mode)
# --------------------------------------------------------------------------
def coords_update_forward(params, a_ij, pos, generate_node_dist, edge_index,
                          generate_node_idxes, mask_edge_inv, *, tile_e=8192):
    E, H, D = a_ij.shape
    HD = H * D
    N = pos.shape[0]

    w1_blk, b1_t, v, c = _fold_params(params, H, D)
    HD2 = w1_blk.shape[1]

    # Edges-major, heads flattened: reshape of a contiguous array is free; the
    # raw tensor is DMA'd straight into the kernel (no pad copy, no pre-cast).
    a_flat = a_ij.reshape(E, HD)

    # Large edge tiles amortize ~0.35us/step overhead; cap so moderate/large E
    # still yields >=2 grid steps so the "parallel" edge axis can shard across
    # v7x's two TensorCores (irrelevant on v5e/v6e: 1 TC each).
    tile = min(_round_up(tile_e, 128), _round_up(E, 8))
    if E > 1024 and _cdiv(E, tile) < 2:
        tile = _round_up(_cdiv(E, 2), 128)
    tile = max(tile, 8)
    steps = _cdiv(E, tile)
    Ep = steps * tile     # the last block may read rows past E; those output
                          # lanes are garbage and are sliced off below.

    att_row = pl.pallas_call(
        _att_mlp_kernel,
        out_shape=jax.ShapeDtypeStruct((1, Ep), jnp.float32),
        grid=(steps,),
        in_specs=[
            pl.BlockSpec((tile, HD), lambda i: (i, 0)),   # a_ij block
            pl.BlockSpec((HD, HD2), lambda i: (0, 0)),    # block-diag W1 (bf16)
            pl.BlockSpec((1, HD2), lambda i: (0, 0)),     # tiled b1
            pl.BlockSpec((1, HD2), lambda i: (0, 0)),     # fused w2*wh vector
        ],
        out_specs=pl.BlockSpec((1, tile), lambda i: (0, i)),   # lane-dense row
        compiler_params=pltpu.CompilerParams(
            dimension_semantics=("parallel",),
            # Headroom over the 16/32 MiB scoped defaults (f32 input blocks +
            # in-kernel temporaries); still well under v7x's 64 MiB physical.
            vmem_limit_bytes=48 * 1024 * 1024),
    )(a_flat, w1_blk, b1_t, v)

    att = att_row[0, :E][:, None] + c                                  # [E, 1]

    # ---- tiny per-edge geometry stays in fused XLA glue -------------------
    src, dst = edge_index[0], edge_index[1]
    edge_mask = jnp.isin(src, generate_node_idxes)
    inv = mask_edge_inv[:, 0].astype(bool)
    valid = (edge_mask & jnp.logical_not(inv)).astype(jnp.float32)[:, None]

    dx = (pos[src] - pos[dst]).astype(jnp.float32)
    dx = dx / (jnp.sqrt(jnp.sum(dx * dx, axis=-1, keepdims=True)) + EPS)
    weighted = dx * valid * att                                        # [E, 3]

    # TODO(synk): data-dependent scatter-add (torch_scatter 'sum') has no clean
    # rectangular-DMA Pallas pattern; done as an XLA segment add in glue.
    summed = jnp.zeros((N, 3), jnp.float32).at[src].add(weighted)

    g = summed[generate_node_idxes]                                    # [G, 3]
    g = g / (jnp.sqrt(jnp.sum(g * g, axis=-1, keepdims=True)) + EPS)
    return g * generate_node_dist.astype(jnp.float32)


# --------------------------------------------------------------------------
# Pure-JAX reference (mirrors the PyTorch forward, eval mode)
# --------------------------------------------------------------------------
def _reference(params, a_ij, pos, d_ij, edge_index, gen_idx, mask_edge_inv):
    w1, b1, w2, b2, wh = params
    hp = jax.lax.Precision.HIGHEST
    em = jnp.isin(edge_index[0], gen_idx)
    inv = mask_edge_inv[:, 0][em]
    ei = edge_index[:, em]
    a = a_ij[em]
    dx = pos[ei[0]] - pos[ei[1]]
    dx = dx / (jnp.linalg.norm(dx, axis=-1, keepdims=True) + EPS)
    dx = jnp.where(inv[:, None], 0.0, dx)
    pre = jnp.einsum('ehd,dk->ehk', a, w1, precision=hp) + b1
    h = jnp.where(pre > 0, pre, NEG_SLOPE * pre)
    s = jnp.einsum('ehk,k->eh', h, w2[:, 0], precision=hp) + b2[0]     # [E', H]
    att = jnp.einsum('eh,h->e', s, wh[:, 0], precision=hp)[:, None]    # [E', 1]
    dx = dx * att
    summed = jnp.zeros((pos.shape[0], 3), jnp.float32).at[ei[0]].add(dx)
    g = summed[gen_idx]
    return g / (jnp.linalg.norm(g, axis=-1, keepdims=True) + EPS) * d_ij


if __name__ == "__main__":
    key = jax.random.PRNGKey(0)
    N, E, H, D, G = 16, 32, 4, 32, 4          # nodes, edges, num_head, dim_dh, generated nodes
    D2 = D // 2
    ks = jax.random.split(key, 10)

    a_ij = jax.random.normal(ks[0], (E, H, D), jnp.float32)
    pos = jax.random.normal(ks[1], (N, 3), jnp.float32)
    edge_index = jax.random.randint(ks[2], (2, E), 0, N, dtype=jnp.int32)
    generate_node_idxes = jnp.array([12, 13, 14, 15], dtype=jnp.int32)
    generate_node_dist = jax.random.uniform(ks[3], (G, 1), jnp.float32, 0.5, 2.0)
    mask_edge_inv = jax.random.bernoulli(ks[4], 0.2, (E, 1))

    # deterministic synthetic parameters (shapes from coords_update.__init__)
    w1 = jax.random.normal(ks[5], (D, D2), jnp.float32) / jnp.sqrt(jnp.float32(D))
    b1 = jax.random.normal(ks[6], (D2,), jnp.float32) * 0.1
    w2 = jax.random.normal(ks[7], (D2, 1), jnp.float32) / jnp.sqrt(jnp.float32(D2))
    b2 = jax.random.normal(ks[8], (1,), jnp.float32) * 0.1
    wh = jax.random.normal(ks[9], (H, 1), jnp.float32) / jnp.sqrt(jnp.float32(H))
    params = (w1, b1, w2, b2, wh)

    out = coords_update_forward(params, a_ij, pos, generate_node_dist,
                                edge_index, generate_node_idxes, mask_edge_inv)
    out = jax.block_until_ready(out)

    # reference at matched (bf16-rounded) matmul-operand precision
    a_bf = a_ij.astype(jnp.bfloat16).astype(jnp.float32)
    w1_bf = w1.astype(jnp.bfloat16).astype(jnp.float32)
    ref = _reference((w1_bf, b1, w2, b2, wh), a_bf, pos, generate_node_dist,
                     edge_index, generate_node_idxes, mask_edge_inv)

    assert out.shape == (G, 3)
    assert jnp.allclose(out, ref, atol=1e-3, rtol=1e-3), (out, ref)
    print("KERNEL_OK")
</pallas_src>

<mosaic_0001>
module attributes {stable_mosaic.version = 11 : i64} {
  func.func @_att_mlp_kernel(%arg0: i32, %arg1: memref<32x128xf32, #tpu.memory_space<vmem>>, %arg2: memref<128x64xbf16, #tpu.memory_space<vmem>>, %arg3: memref<1x64xf32, #tpu.memory_space<vmem>>, %arg4: memref<1x64xf32, #tpu.memory_space<vmem>>, %arg5: memref<1x32xf32, #tpu.memory_space<vmem>>) attributes {dimension_semantics = [#tpu.dimension_semantics<parallel>], iteration_bounds = array<i64: 1>, scalar_prefetch = 0 : i64, scratch_operands = 0 : i64, tpu.core_type = #tpu.core_type<tc>, window_params = [{transform_indices = @transform_0, window_bounds = array<i64: 32, 128>}, {pipeline_mode = #tpu.pipeline_mode<synchronous>, transform_indices = @transform_1, window_bounds = array<i64: 128, 64>}, {pipeline_mode = #tpu.pipeline_mode<synchronous>, transform_indices = @transform_2, window_bounds = array<i64: 1, 64>}, {pipeline_mode = #tpu.pipeline_mode<synchronous>, transform_indices = @transform_3, window_bounds = array<i64: 1, 64>}, {transform_indices = @transform_4, window_bounds = array<i64: 1, 32>}]} {
    %c0 = arith.constant 0 : index
    %c0_0 = arith.constant 0 : index
    %0 = vector.load %arg1[%c0, %c0_0] : memref<32x128xf32, #tpu.memory_space<vmem>>, vector<32x128xf32>
    %1 = arith.truncf %0 : vector<32x128xf32> to vector<32x128xbf16>
    %c0_1 = arith.constant 0 : index
    %c0_2 = arith.constant 0 : index
    %2 = vector.load %arg2[%c0_1, %c0_2] : memref<128x64xbf16, #tpu.memory_space<vmem>>, vector<128x64xbf16>
    %cst = arith.constant dense<0.000000e+00> : vector<32x64xf32>
    %3 = tpu.matmul %1, %2, %cst {dimension_numbers = #tpu.dot_dimension_numbers<[1], [0], [0], [1], [0, 0, 1, 1], [], []>} : vector<32x128xbf16>, vector<128x64xbf16>, vector<32x64xf32> -> vector<32x64xf32>
    %c0_3 = arith.constant 0 : index
    %c0_4 = arith.constant 0 : index
    %4 = vector.load %arg3[%c0_3, %c0_4] : memref<1x64xf32, #tpu.memory_space<vmem>>, vector<1x64xf32>
    %5 = vector.broadcast %4 : vector<1x64xf32> to vector<32x64xf32>
    %6 = arith.addf %3, %5 : vector<32x64xf32>
    %cst_5 = arith.constant 0.000000e+00 : f32
    %7 = vector.broadcast %cst_5 : f32 to vector<32x64xf32>
    %8 = arith.cmpf ogt, %6, %7 : vector<32x64xf32>
    %cst_6 = arith.constant 0.00999999977 : f32
    %9 = vector.broadcast %cst_6 : f32 to vector<32x64xf32>
    %10 = arith.mulf %9, %6 : vector<32x64xf32>
    %11 = arith.select %8, %6, %10 : vector<32x64xi1>, vector<32x64xf32>
    %c0_7 = arith.constant 0 : index
    %c0_8 = arith.constant 0 : index
    %12 = vector.load %arg4[%c0_7, %c0_8] : memref<1x64xf32, #tpu.memory_space<vmem>>, vector<1x64xf32>
    %cst_9 = arith.constant dense<0.000000e+00> : vector<1x32xf32>
    %13 = tpu.matmul %12, %11, %cst_9 {dimension_numbers = #tpu.dot_dimension_numbers<[1], [1], [0], [0], [0, 0, 1, 0], [], []>, precision = #tpu.contract_precision<fp32>} : vector<1x64xf32>, vector<32x64xf32>, vector<1x32xf32> -> vector<1x32xf32>
    %c0_10 = arith.constant 0 : index
    %c0_11 = arith.constant 0 : index
    %14 = vector.load %arg5[%c0_10, %c0_11] : memref<1x32xf32, #tpu.memory_space<vmem>>, vector<1x32xf32>
    tpu.vector_store %arg5[%c0_10, %c0_11], %13 {strides = array<i32>} : memref<1x32xf32, #tpu.memory_space<vmem>>, vector<1x32xf32>,
    return
  }
  func.func @transform_0(%arg0: i32) -> (i32, i32) {
    %c0_i32 = arith.constant 0 : i32
    %c0_i32_0 = arith.constant 0 : i32
    return %arg0, %c0_i32 : i32, i32
  }
  func.func @transform_1(%arg0: i32) -> (i32, i32) {
    %c0_i32 = arith.constant 0 : i32
    %c0_i32_0 = arith.constant 0 : i32
    %c0_i32_1 = arith.constant 0 : i32
    return %c0_i32, %c0_i32_0 : i32, i32
  }
  func.func @transform_2(%arg0: i32) -> (i32, i32) {
    %c0_i32 = arith.constant 0 : i32
    %c0_i32_0 = arith.constant 0 : i32
    %c0_i32_1 = arith.constant 0 : i32
    return %c0_i32, %c0_i32_0 : i32, i32
  }
  func.func @transform_3(%arg0: i32) -> (i32, i32) {
    %c0_i32 = arith.constant 0 : i32
    %c0_i32_0 = arith.constant 0 : i32
    %c0_i32_1 = arith.constant 0 : i32
    return %c0_i32, %c0_i32_0 : i32, i32
  }
  func.func @transform_4(%arg0: i32) -> (i32, i32) {
    %c0_i32 = arith.constant 0 : i32
    %c0_i32_0 = arith.constant 0 : i32
    return %c0_i32, %arg0 : i32, i32
  }
}

</mosaic_0001>

<bundles_post_ra>
// kernel: tpu_custom_call.1
= control target key start
LH: loop header
LB: loop body
LE: loop exit
PB: predicated region body
PF: predicated region fallthrough
CT: control target
= control target key end

     0   :  { %s986_s0 = inlined_call_operand.vmem [shape: f32[32,128], index: 0, kind: input, shape index: {}]   ;;  %s987_s1 = inlined_call_operand.vmem [shape: bf16[128,64], index: 1, kind: input, shape index: {}]   ;;  %s988_s2 = inlined_call_operand.vmem [shape: f32[1,64], index: 2, kind: input, shape index: {}]   ;;  %s989_s3 = inlined_call_operand.vmem [shape: f32[1,64], index: 3, kind: input, shape index: {}]   ;;  %s990_s4 = inlined_call_operand.hbm [shape: f32[1,32], index: 4, kind: output, shape index: {}]  }
   0x1   :  { %v813_v0 = vld [vmem:[%s987_s1 + $0x38] sm:$0xff]   ;;  %v814_v1 = vld [vmem:[%s987_s1 + $0x30] sm:$0xff]   ;;  %v815_v2 = vld [vmem:[%s987_s1 + $0x28] sm:$0xff]  }
   0x2   :  { %724 = vmatprep.subr.bf16.mxu0 %v813_v0  ;;  %v816_v3 = vld [vmem:[%s987_s1 + $0x20] sm:$0xff]   ;;  %v20_v5 = vld [vmem:[%s986_s0 + $0x8] sm:$0xff] }
   0x3   :  { %725 = vmatpush3.bf16.msra.mxu0 %v813_v0  ;;  %v19_v4 = vld [vmem:[%s986_s0] sm:$0xff] }
   0x4   :  { %726 = vmatprep.subr.bf16.mxu0 %v814_v1  ;;  %v23_v6 = vpack.c.bf16 %v20_v5, %v19_v4 }
   0x7   :  { %727 = vmatpush3.bf16.msra.mxu0 %v814_v1 }
   0x8   :  { %728 = vmatprep.subr.bf16.mxu0 %v815_v2 }
   0x9   :  { %9 = vsyncpa [#allocation3], 0  ;;  %740 = vmatprep.mubr.bf16.mxu0 %v23_v6  ;;  %v817_v7 = vld [vmem:[%s987_s1 + $0x18] sm:$0xff]   ;;  %v818_v8 = vld [vmem:[%s987_s1 + $0x10] sm:$0xff]   ;;  %v843_v14 = vmov 0.0   ;;  %vm844_vm0 = vmmov 0  }
   0xa   :  { %v819_v9 = vld [vmem:[%s987_s1 + $0x8] sm:$0xff]   ;;  %v820_v10 = vld [vmem:[%s987_s1] sm:$0xff]   ;;  %v21_v11 = vld [vmem:[%s986_s0 + $0x10] sm:$0xff]  ;;  %744 = vmatprep.subr.mxu1 %v843_v14  ;;  %752 = vmatprep.mubr.msk.f32.mxu1 %vm844_vm0, %v843_v14  ;;  %vm158_vm2 = vcmask 523264   ;;  %vm659_vm6 = vcmask 253952  }
   0xb   :  { %729 = vmatpush3.bf16.msra.mxu0 %v815_v2  ;;  %v22_v12 = vld [vmem:[%s986_s0 + $0x18] sm:$0xff]  ;;  %v675_v15 = vld [vmem:[%s988_s2] ss:$0 sm:$0xff]  ;;  %s845_s2 = smov [#allocation2]  }
   0xc   :  { %730 = vmatprep.subr.bf16.mxu0 %v816_v3  ;;  %v24_v13 = vpack.c.bf16 %v22_v12, %v21_v11  ;;  %v157_v19 = vld [vmem:[%s989_s3] sm:$0x1]  ;;  %s667_s3 = sshll.u32 %s845_s2, 4  ;;  %s668_s3 = int_to_ptr.vmem [resolvable:$true] %s667_s3 }
   0xd   :  { %v160_v23 = vsel %vm158_vm2, %v157_v19, 0  ;;  %s821_s15 = scalar_lea.vmem %s668_s3, 16  ;;  %s825_s16 = scalar_lea.vmem %s668_s3, 32 }
   0xe   :  { %v920_v29 = vand.u32 4294901760, %v160_v23  ;;  %p822_p0 = scmp.ne.s32.totalorder %s668_s3, %s821_s15  ;;  %p826_p1 = scmp.lt.s32.totalorder %s668_s3, %s668_s3 }
   0xf   :  { %731 = vmatpush3.bf16.msra.mxu0 %v816_v3  ;;  %p827_p2 = scmp.lt.s32.totalorder %s825_s16, %s821_s15 }
  0x10   :  { %732 = vmatprep.subr.bf16.mxu0 %v817_v7  ;;  %v927_v37 = vsub.f32 %v160_v23, %v920_v29 }
  0x11   :  { %p828_p3 = por %p827_p2, %p826_p1 }
  0x12   :  { %v245_v42 = vand.u32 4294901760, %v927_v37 }
  0x13   :  { %733 = vmatpush3.bf16.msra.mxu0 %v817_v7  ;;  %p829_p4 = pnand %p828_p3, %p822_p0 }
  0x14   :  { %734 = vmatprep.subr.bf16.mxu0 %v818_v8  ;;  %v246_v47 = vsub.f32 %v927_v37, %v245_v42 }
  0x16   :  { %v247_v52 = vand.u32 4294901760, %v246_v47 }
  0x17   :  { %735 = vmatpush3.bf16.msra.mxu0 %v818_v8 }
  0x18   :  { %736 = vmatprep.subr.bf16.mxu0 %v819_v9 }
  0x1b   :  { %737 = vmatpush3.bf16.msra.mxu0 %v819_v9 }
  0x1c   :  { %738 = vmatprep.subr.bf16.mxu0 %v820_v10 }
  0x1f   :  { %739 = vmatpush3.bf16.msra.mxu0 %v820_v10 }
  0x20   :  { %766 = vmatprep.subr.mxu0 %v843_v14 }
  0x22   :  { %741 = vmatmul.mubr.bf16.vlgmr.msra.gmra.mxu0 %v24_v13 }
  0x23   :  { %774 = vmatprep.mubr.msk.f32.mxu0 %vm844_vm0, %v843_v14 }
  0xe2   :  { %v742_v16 = vpop.f32.mrf.mxu0 }
  0xe3   :  { %v139_v17 = vadd.f32 %v742_v16, %v675_v15 }
  0xe4   :  { %v130_v18 = vpop.f32.mrf.mxu0 }
  0xe5   :  { %v151_v20 = vmul.f32 0.01, %v139_v17  ;;  %vm147_vm1 = vcmp.gt.f32.partialorder %v139_v17, 0.0  ;;  %v131_v26 = vadd.f32 %v675_v15, %v130_v18 }
  0xe6   :  { %v743_v21 = vpop.f32.mrf.mxu0 }
  0xe7   :  { %v142_v22 = vadd.f32 %v743_v21, %v675_v15  ;;  %v155_v25 = vsel %vm147_vm1, %v139_v17, %v151_v20  ;;  %v149_v34 = vmul.f32 0.01, %v131_v26  ;;  %vm145_vm5 = vcmp.gt.f32.partialorder %v131_v26, 0.0 }
  0xe8   :  { %v133_v24 = vpop.f32.mrf.mxu0  ;;  %v169_v31 = vsel %vm158_vm2, %v155_v25, 0 }
  0xe9   :  { %vm148_vm3 = vcmp.gt.f32.partialorder %v142_v22, 0.0  ;;  %v152_v27 = vmul.f32 0.01, %v142_v22  ;;  %v134_v28 = vadd.f32 %v675_v15, %v133_v24  ;;  %v929_v38 = vand.u32 4294901760, %v169_v31 }
  0xea   :  { %v153_v41 = vsel %vm145_vm5, %v131_v26, %v149_v34 }
  0xeb   :  { %v156_v30 = vsel %vm148_vm3, %v142_v22, %v152_v27  ;;  %vm146_vm4 = vcmp.gt.f32.partialorder %v134_v28, 0.0  ;;  %v150_v33 = vmul.f32 0.01, %v134_v28  ;;  %v286_v43 = vsub.f32 %v169_v31, %v929_v38 }
  0xec   :  { %v172_v32 = vsel %vm158_vm2, %v156_v30, 0  ;;  %v163_v45 = vsel %vm158_vm2, %v153_v41, 0 }
  0xed   :  { %v924_v35 = vand.u32 4294901760, %v172_v32  ;;  %v154_v36 = vsel %vm146_vm4, %v134_v28, %v150_v33  ;;  %v208_v48 = vand.u32 4294901760, %v163_v45  ;;  %v287_v51 = vand.u32 4294901760, %v286_v43 }
  0xee   :  { %v166_v40 = vsel %vm158_vm2, %v154_v36, 0 }
  0xef   :  { %v279_v39 = vsub.f32 %v172_v32, %v924_v35  ;;  %745 = vmatpush3.xpose.msra.mxu1 %v924_v35  ;;  %v938_v44 = vand.u32 4294901760, %v166_v40  ;;  %v300_v53 = vsub.f32 %v163_v45, %v208_v48  ;;  %v288_v55 = vsub.f32 %v286_v43, %v287_v51 }
  0xf0   :  { %746 = vmatprep.subr.mxu1 %v843_v14 }
  0xf1   :  { %767 = vmatpush3.xpose.msra.mxu0 %v279_v39  ;;  %v280_v46 = vand.u32 4294901760, %v279_v39  ;;  %v293_v49 = vsub.f32 %v166_v40, %v938_v44  ;;  %v289_v57 = vand.u32 4294901760, %v288_v55  ;;  %v301_v59 = vand.u32 4294901760, %v300_v53 }
  0xf2   :  { %768 = vmatprep.subr.mxu0 %v843_v14 }
  0xf3   :  { %747 = vmatpush3.xpose.msra.mxu1 %v929_v38  ;;  %v281_v50 = vsub.f32 %v279_v39, %v280_v46  ;;  %v294_v56 = vand.u32 4294901760, %v293_v49  ;;  %v302_v61 = vsub.f32 %v300_v53, %v301_v59 }
  0xf4   :  { %748 = vmatprep.subr.mxu1 %v843_v14 }
  0xf5   :  { %769 = vmatpush3.xpose.msra.mxu0 %v286_v43  ;;  %v282_v54 = vand.u32 4294901760, %v281_v50  ;;  %v295_v58 = vsub.f32 %v293_v49, %v294_v56  ;;  %v303_v62 = vand.u32 4294901760, %v302_v61 }
  0xf6   :  { %770 = vmatprep.subr.mxu0 %v843_v14 }
  0xf7   :  { %749 = vmatpush3.xpose.msra.mxu1 %v938_v44  ;;  %v296_v60 = vand.u32 4294901760, %v295_v58 }
  0xf8   :  { %750 = vmatprep.subr.mxu1 %v843_v14 }
  0xf9   :  { %771 = vmatpush3.xpose.msra.mxu0 %v293_v49 }
  0xfa   :  { %772 = vmatprep.subr.mxu0 %v843_v14 }
  0xfb   :  { %751 = vmatpush3.xpose.msra.mxu1 %v208_v48 }
  0xfc   :  { %755 = vmatprep.subr.mxu1 %v843_v14 }
  0xfd   :  { %773 = vmatpush3.xpose.msra.mxu0 %v300_v53 }
  0xfe   :  { %753 = vmatmul.mubr.f32.vlgmr.msra.gmra.mxu1 %v247_v52  ;;  %788 = vmatprep.subr.mxu0 %v843_v14 }
  0xff   :  { %756 = vmatpush3.xpose.msra.mxu1 %v282_v54  ;;  %763 = vmatprep.mubr.msk.f32.mxu1 %vm844_vm0, %v843_v14 }
 0x100   :  { %775 = vmatmul.mubr.f32.vlgmr.msra.gmra.mxu0 %v927_v37  ;;  %757 = vmatprep.subr.mxu1 %v843_v14 }
 0x101   :  { %789 = vmatpush3.xpose.msra.mxu0 %v280_v46  ;;  %796 = vmatprep.mubr.msk.f32.mxu0 %vm844_vm0, %v843_v14 }
 0x102   :  { %790 = vmatprep.subr.mxu0 %v843_v14 }
 0x103   :  { %758 = vmatpush3.xpose.msra.mxu1 %v289_v57 }
 0x104   :  { %759 = vmatprep.subr.mxu1 %v843_v14 }
 0x105   :  { %791 = vmatpush3.xpose.msra.mxu0 %v287_v51 }
 0x106   :  { %792 = vmatprep.subr.mxu0 %v843_v14 }
 0x107   :  { %760 = vmatpush3.xpose.msra.mxu1 %v296_v60 }
 0x108   :  { %761 = vmatprep.subr.mxu1 %v843_v14 }
 0x109   :  { %793 = vmatpush3.xpose.msra.mxu0 %v294_v56 }
 0x10a   :  { %794 = vmatprep.subr.mxu0 %v843_v14 }
 0x10b   :  { %762 = vmatpush3.xpose.msra.mxu1 %v303_v62 }
 0x10c   :  { %777 = vmatprep.subr.mxu1 %v843_v14 }
 0x10d   :  { %795 = vmatpush3.xpose.msra.mxu0 %v301_v59 }
 0x10e   :  { %764 = vmatmul.mubr.f32.vlgmr.msra.gmra.mxu1 %v920_v29 }
 0x10f   :  { %778 = vmatpush3.xpose.msra.mxu1 %v924_v35  ;;  %785 = vmatprep.mubr.msk.f32.mxu1 %vm844_vm0, %v843_v14 }
 0x110   :  { %779 = vmatprep.subr.mxu1 %v843_v14  ;;  %797 = vmatmul.mubr.f32.vlgmr.msra.gmra.mxu0 %v920_v29 }
 0x113   :  { %780 = vmatpush3.xpose.msra.mxu1 %v929_v38 }
 0x114   :  { %781 = vmatprep.subr.mxu1 %v843_v14 }
 0x117   :  { %782 = vmatpush3.xpose.msra.mxu1 %v938_v44 }
 0x118   :  { %783 = vmatprep.subr.mxu1 %v843_v14 }
 0x11b   :  { %784 = vmatpush3.xpose.msra.mxu1 %v208_v48 }
 0x11c   :  { %799 = vmatprep.subr.mxu1 %v843_v14 }
 0x11e   :  { %786 = vmatmul.mubr.f32.vlgmr.msra.gmra.mxu1 %v245_v42 }
 0x11f   :  { %800 = vmatpush3.xpose.msra.mxu1 %v924_v35  ;;  %807 = vmatprep.mubr.msk.f32.mxu1 %vm844_vm0, %v843_v14 }
 0x120   :  { %801 = vmatprep.subr.mxu1 %v843_v14 }
 0x123   :  { %802 = vmatpush3.xpose.msra.mxu1 %v929_v38 }
 0x124   :  { %803 = vmatprep.subr.mxu1 %v843_v14 }
 0x127   :  { %804 = vmatpush3.xpose.msra.mxu1 %v938_v44 }
 0x128   :  { %805 = vmatprep.subr.mxu1 %v843_v14 }
 0x12b   :  { %806 = vmatpush3.xpose.msra.mxu1 %v208_v48 }
 0x12e   :  { %808 = vmatmul.mubr.f32.vlgmr.msra.gmra.mxu1 %v920_v29 }
 0x1be   :  { %v249_v63 = vpop.f32.mrf.mxu1 }
 0x1c0   :  { %v754_v0 = vpop.f32.mrf.mxu1  ;;  %v420_v1 = vpop.f32.mrf.mxu0 }
 0x1c2   :  { %v776_v2 = vpop.f32.mrf.mxu0 }
 0x1ce   :  { %v340_v3 = vpop.f32.mrf.mxu1 }
 0x1cf   :  { %v341_v9 = vadd.f32 %v340_v3, %v249_v63 }
 0x1d0   :  { %v765_v4 = vpop.f32.mrf.mxu1  ;;  %v580_v5 = vpop.f32.mrf.mxu0 }
 0x1d1   :  { %v421_v10 = vadd.f32 %v420_v1, %v341_v9 }
 0x1d2   :  { %v798_v6 = vpop.f32.mrf.mxu0 }
 0x1de   :  { %v497_v7 = vpop.f32.mrf.mxu1 }
 0x1df   :  { %v498_v11 = vadd.f32 %v497_v7, %v421_v10 }
 0x1e0   :  { %v787_v8 = vpop.f32.mrf.mxu1 }
 0x1e1   :  { %v581_v12 = vadd.f32 %v580_v5, %v498_v11 }
 0x1ee   :  { %v655_v13 = vpop.f32.mrf.mxu1 }
 0x1ef   :  { %v656_v14 = vadd.f32 %v655_v13, %v581_v12 }
 0x1f0   :  { %v809_v15 = vpop.f32.mrf.mxu1 }
 0x1f1   :  { %660 = vst.msk [vmem:[#allocation2] sm:$0x1] %vm659_vm6, %v656_v14 }
 0x1f2   :  { %832 = shalt.err (!%p829_p4)
}
 0x1f3   :  { %670 = dma.vmem_to_hbm [thread:$0]  %s668_s3, 16, %s990_s4, [#allocation3]  }
 0x1f4   :  { %841 = dma.done.wait [#allocation3], 16  }
 0x1f5   :  { %842 = vsyncadd [#allocation3], 4294967280 }
 0x1f6   :  { %674 = vsyncpa [#allocation3], 1 }

</bundles_post_ra>
